<compile_context>
chip_gen: v7x
topology: tpu7x:2x2x1
jax: 0.10.0
libtpu: 0.0.40
codegen_flags: <defaults>
</compile_context>

<pallas_src>
import functools

import jax
import jax.numpy as jnp
from jax.experimental import pallas as pl
from jax.experimental.pallas import tpu as pltpu


def _round_up(x, m):
    return -(-x // m) * m


def _mlp_policy_tan_kernel(x_ref, w1_ref, b1_ref, w2_ref, b2_ref,
                           w3_ref, b3_ref, out_ref, *, compute_dtype):
    # x: [obs_dim, TB]  (batch on the lane axis).
    x = x_ref[...].astype(compute_dtype)

    # Layer 1: Linear(obs_dim, 16) + Tanh            -> [16, TB]
    h1 = jnp.tanh(
        jnp.dot(w1_ref[...].astype(compute_dtype), x,
                preferred_element_type=jnp.float32) + b1_ref[...]
    ).astype(compute_dtype)

    # Layer 2: Linear(16, 8) + Tanh                  -> [8, TB]
    h2 = jnp.tanh(
        jnp.dot(w2_ref[...].astype(compute_dtype), h1,
                preferred_element_type=jnp.float32) + b2_ref[...]
    ).astype(compute_dtype)

    # Layer 3: Linear(8, action_dim)                 -> [action_dim, TB]  (f32)
    logits = (jnp.dot(w3_ref[...].astype(compute_dtype), h2,
                      preferred_element_type=jnp.float32) + b3_ref[...])

    if out_ref.shape[0] == 2:
        # 2-action softmax == sigmoid of the logit difference: exact
        # normalization (p0 + p1 == 1) and one EUP logistic instead of
        # 2 exps + sublane max/sum + reciprocal.
        d = logits[0:1, :] - logits[1:2, :]
        p0 = jax.nn.sigmoid(d)
        probs = jnp.concatenate([p0, 1.0 - p0], axis=0)
    else:
        # Numerically stable softmax over the action axis, exact divide.
        m = jnp.max(logits, axis=0, keepdims=True)
        e = jnp.exp(logits - m)
        probs = e / jnp.sum(e, axis=0, keepdims=True)

    out_ref[...] = probs.astype(out_ref.dtype)


@functools.partial(
    jax.jit,
    static_argnames=("block_b", "compute_dtype", "feature_major_output"))
def _mlp_policy_tan_pallas(obs, params, *, block_b=32768,
                           compute_dtype=jnp.float32,
                           feature_major_output=False):
    batch, obs_dim = obs.shape
    action_dim = params["w3"].shape[0]

    # Lane tile: multiple of 128, capped at block_b.
    lanes = _round_up(batch, 128)
    tb = max(128, (min(int(block_b), lanes) // 128) * 128)
    # Ensure >= 2 grid steps whenever there is enough work so the "parallel"
    # batch axis can be sharded across v7x's two TensorCores.
    if lanes >= 256 and lanes <= tb:
        tb = _round_up(-(-lanes // 2), 128)
    grid_n = -(-lanes // tb)
    padded_b = grid_n * tb

    # Lane-dense layout: batch on the last axis; zero-pad (extra cols discarded).
    # This transpose/pad is inside the same jit as the pallas_call.
    obs_t = jnp.transpose(obs)                         # [obs_dim, batch]
    if padded_b != batch:
        obs_t = jnp.pad(obs_t, ((0, 0), (0, padded_b - batch)))

    def const_spec(shape):
        # Full-array block with a constant index map: resident in VMEM,
        # not re-fetched per grid step.
        return pl.BlockSpec(shape, lambda i: (0,) * len(shape))

    kernel = functools.partial(_mlp_policy_tan_kernel,
                               compute_dtype=compute_dtype)

    out_t = pl.pallas_call(
        kernel,
        out_shape=jax.ShapeDtypeStruct((action_dim, padded_b), jnp.float32),
        grid=(grid_n,),
        in_specs=[
            pl.BlockSpec((obs_dim, tb), lambda i: (0, i)),   # obs^T batch tiles
            const_spec(params["w1"].shape),
            const_spec(params["b1"].shape),
            const_spec(params["w2"].shape),
            const_spec(params["b2"].shape),
            const_spec(params["w3"].shape),
            const_spec(params["b3"].shape),
        ],
        out_specs=pl.BlockSpec((action_dim, tb), lambda i: (0, i)),
        compiler_params=pltpu.CompilerParams(
            dimension_semantics=("parallel",),       # batch tiles over 2 TCs (v7x)
            vmem_limit_bytes=32 * 1024 * 1024,       # explicit (v5e default is 16 MiB)
        ),
    )(obs_t, params["w1"], params["b1"], params["w2"], params["b2"],
      params["w3"], params["b3"])

    if feature_major_output:
        return out_t[:, :batch]                      # [action_dim, batch]
    return jnp.transpose(out_t)[:batch]              # [batch, action_dim]


def mlp_policy_tan(obs, params, *, block_b=32768, min_pallas_batch=4096,
                   compute_dtype=jnp.float32, feature_major_output=False):
    """Forward pass of MLP_policy_tan.

    obs:    [batch, obs_dim] float32
    params: dict with w1[16,obs_dim], b1[16,1], w2[8,16], b2[8,1],
            w3[action_dim,8], b3[action_dim,1]  (PyTorch [out,in] layout)
    returns [batch, action_dim] float32 probabilities (rows sum to 1),
            or [action_dim, batch] if feature_major_output=True.
    """
    if obs.shape[0] < min_pallas_batch:
        # Small-batch fast path: one fused XLA kernel beats the pallas_call
        # launch + wrapper layout plumbing at RL-rollout batch sizes.
        out = mlp_policy_tan_reference(obs, params)
        return out.T if feature_major_output else out
    return _mlp_policy_tan_pallas(obs, params, block_b=block_b,
                                  compute_dtype=compute_dtype,
                                  feature_major_output=feature_major_output)


def mlp_policy_tan_reference(obs, params):
    """Pure-JAX reference identical to the PyTorch module."""
    h1 = jnp.tanh(obs @ params["w1"].T + params["b1"][:, 0])
    h2 = jnp.tanh(h1 @ params["w2"].T + params["b2"][:, 0])
    logits = h2 @ params["w3"].T + params["b3"][:, 0]
    return jax.nn.softmax(logits, axis=-1)


def init_params(key, obs_dim, action_dim):
    """Deterministic init mimicking PyTorch nn.Linear default
    (uniform(-1/sqrt(fan_in), 1/sqrt(fan_in)) for weight and bias),
    stored in PyTorch's [out_features, in_features] layout."""
    def linear_init(k, fan_in, fan_out):
        kw, kb = jax.random.split(k)
        bound = 1.0 / jnp.sqrt(jnp.float32(fan_in))
        w = jax.random.uniform(kw, (fan_out, fan_in), jnp.float32, -bound, bound)
        b = jax.random.uniform(kb, (fan_out, 1), jnp.float32, -bound, bound)
        return w, b

    k1, k2, k3 = jax.random.split(key, 3)
    w1, b1 = linear_init(k1, obs_dim, 16)
    w2, b2 = linear_init(k2, 16, 8)
    w3, b3 = linear_init(k3, 8, action_dim)
    return {"w1": w1, "b1": b1, "w2": w2, "b2": b2, "w3": w3, "b3": b3}


if __name__ == "__main__":
    key = jax.random.PRNGKey(0)
    k_params, k_params3, k_obs = jax.random.split(key, 3)

    # Iterated prisoner's dilemma: small obs / action dims.  batch=200 gives
    # lane padding plus (with the >=2-step rule) two grid steps.
    batch, obs_dim, action_dim = 200, 4, 2

    params = init_params(k_params, obs_dim, action_dim)
    obs = jax.random.normal(k_obs, (batch, obs_dim), dtype=jnp.float32)

    # Force the Pallas path (min_pallas_batch=0) so the kernel is exercised.
    probs = mlp_policy_tan(obs, params, min_pallas_batch=0)
    probs = jax.block_until_ready(probs)

    assert probs.shape == (batch, action_dim)
    assert jnp.allclose(jnp.sum(probs, axis=-1), 1.0, atol=1e-5)
    ref = mlp_policy_tan_reference(obs, params)
    assert jnp.allclose(probs, ref, atol=1e-5, rtol=1e-5)

    # Also exercise the general (action_dim != 2) softmax branch.
    params3 = init_params(k_params3, obs_dim, 3)
    probs3 = jax.block_until_ready(
        mlp_policy_tan(obs, params3, min_pallas_batch=0))
    assert probs3.shape == (batch, 3)
    assert jnp.allclose(jnp.sum(probs3, axis=-1), 1.0, atol=1e-5)
    assert jnp.allclose(probs3, mlp_policy_tan_reference(obs, params3),
                        atol=1e-5, rtol=1e-5)

    # Small-batch fallback path (pure-JAX) also matches.
    probs_fb = jax.block_until_ready(mlp_policy_tan(obs, params))
    assert jnp.allclose(probs_fb, ref, atol=1e-6, rtol=1e-6)

    print("KERNEL_OK")
</pallas_src>

<mosaic_0001>
module attributes {stable_mosaic.version = 11 : i64} {
  func.func @_mlp_policy_tan_kernel(%arg0: i32, %arg1: memref<4x128xf32, #tpu.memory_space<vmem>>, %arg2: memref<16x4xf32, #tpu.memory_space<vmem>>, %arg3: memref<16x1xf32, #tpu.memory_space<vmem>>, %arg4: memref<8x16xf32, #tpu.memory_space<vmem>>, %arg5: memref<8x1xf32, #tpu.memory_space<vmem>>, %arg6: memref<2x8xf32, #tpu.memory_space<vmem>>, %arg7: memref<2x1xf32, #tpu.memory_space<vmem>>, %arg8: memref<2x128xf32, #tpu.memory_space<vmem>>) attributes {dimension_semantics = [#tpu.dimension_semantics<parallel>], iteration_bounds = array<i64: 2>, scalar_prefetch = 0 : i64, scratch_operands = 0 : i64, tpu.core_type = #tpu.core_type<tc>, window_params = [{transform_indices = @transform_0, window_bounds = array<i64: 4, 128>}, {pipeline_mode = #tpu.pipeline_mode<synchronous>, transform_indices = @transform_1, window_bounds = array<i64: 16, 4>}, {pipeline_mode = #tpu.pipeline_mode<synchronous>, transform_indices = @transform_2, window_bounds = array<i64: 16, 1>}, {pipeline_mode = #tpu.pipeline_mode<synchronous>, transform_indices = @transform_3, window_bounds = array<i64: 8, 16>}, {pipeline_mode = #tpu.pipeline_mode<synchronous>, transform_indices = @transform_4, window_bounds = array<i64: 8, 1>}, {pipeline_mode = #tpu.pipeline_mode<synchronous>, transform_indices = @transform_5, window_bounds = array<i64: 2, 8>}, {pipeline_mode = #tpu.pipeline_mode<synchronous>, transform_indices = @transform_6, window_bounds = array<i64: 2, 1>}, {transform_indices = @transform_7, window_bounds = array<i64: 2, 128>}]} {
    %c0 = arith.constant 0 : index
    %c0_0 = arith.constant 0 : index
    %0 = vector.load %arg1[%c0, %c0_0] : memref<4x128xf32, #tpu.memory_space<vmem>>, vector<4x128xf32>
    %c0_1 = arith.constant 0 : index
    %c0_2 = arith.constant 0 : index
    %1 = vector.load %arg2[%c0_1, %c0_2] : memref<16x4xf32, #tpu.memory_space<vmem>>, vector<16x4xf32>
    %cst = arith.constant dense<0.000000e+00> : vector<16x128xf32>
    %2 = tpu.matmul %1, %0, %cst {dimension_numbers = #tpu.dot_dimension_numbers<[1], [0], [0], [1], [0, 0, 1, 1], [], []>} : vector<16x4xf32>, vector<4x128xf32>, vector<16x128xf32> -> vector<16x128xf32>
    %c0_3 = arith.constant 0 : index
    %c0_4 = arith.constant 0 : index
    %3 = vector.load %arg3[%c0_3, %c0_4] : memref<16x1xf32, #tpu.memory_space<vmem>>, vector<16x1xf32>
    %4 = vector.broadcast %3 : vector<16x1xf32> to vector<16x128xf32>
    %5 = arith.addf %2, %4 : vector<16x128xf32>
    %6 = math.tanh %5 : vector<16x128xf32>
    %c0_5 = arith.constant 0 : index
    %c0_6 = arith.constant 0 : index
    %7 = vector.load %arg4[%c0_5, %c0_6] : memref<8x16xf32, #tpu.memory_space<vmem>>, vector<8x16xf32>
    %cst_7 = arith.constant dense<0.000000e+00> : vector<8x128xf32>
    %8 = tpu.matmul %7, %6, %cst_7 {dimension_numbers = #tpu.dot_dimension_numbers<[1], [0], [0], [1], [0, 0, 1, 1], [], []>} : vector<8x16xf32>, vector<16x128xf32>, vector<8x128xf32> -> vector<8x128xf32>
    %c0_8 = arith.constant 0 : index
    %c0_9 = arith.constant 0 : index
    %9 = vector.load %arg5[%c0_8, %c0_9] : memref<8x1xf32, #tpu.memory_space<vmem>>, vector<8x1xf32>
    %10 = vector.broadcast %9 : vector<8x1xf32> to vector<8x128xf32>
    %11 = arith.addf %8, %10 : vector<8x128xf32>
    %12 = math.tanh %11 : vector<8x128xf32>
    %c0_10 = arith.constant 0 : index
    %c0_11 = arith.constant 0 : index
    %13 = vector.load %arg6[%c0_10, %c0_11] : memref<2x8xf32, #tpu.memory_space<vmem>>, vector<2x8xf32>
    %cst_12 = arith.constant dense<0.000000e+00> : vector<2x128xf32>
    %14 = tpu.matmul %13, %12, %cst_12 {dimension_numbers = #tpu.dot_dimension_numbers<[1], [0], [0], [1], [0, 0, 1, 1], [], []>} : vector<2x8xf32>, vector<8x128xf32>, vector<2x128xf32> -> vector<2x128xf32>
    %c0_13 = arith.constant 0 : index
    %c0_14 = arith.constant 0 : index
    %15 = vector.load %arg7[%c0_13, %c0_14] : memref<2x1xf32, #tpu.memory_space<vmem>>, vector<2x1xf32>
    %16 = vector.broadcast %15 : vector<2x1xf32> to vector<2x128xf32>
    %17 = arith.addf %14, %16 : vector<2x128xf32>
    %18 = vector.extract_strided_slice %17 {offsets = [0, 0], sizes = [1, 128], strides = [1, 1]} : vector<2x128xf32> to vector<1x128xf32>
    %19 = vector.extract_strided_slice %17 {offsets = [1, 0], sizes = [1, 128], strides = [1, 1]} : vector<2x128xf32> to vector<1x128xf32>
    %20 = arith.subf %18, %19 : vector<1x128xf32>
    %21 = arith.negf %20 : vector<1x128xf32>
    %22 = math.exp %21 : vector<1x128xf32>
    %cst_15 = arith.constant 1.000000e+00 : f32
    %23 = vector.broadcast %cst_15 : f32 to vector<1x128xf32>
    %24 = arith.addf %23, %22 : vector<1x128xf32>
    %25 = arith.divf %23, %24 : vector<1x128xf32>
    %cst_16 = arith.constant 1.000000e+00 : f32
    %26 = vector.broadcast %cst_16 : f32 to vector<1x128xf32>
    %27 = arith.subf %26, %25 : vector<1x128xf32>
    %28 = tpu.concatenate %25, %27 in 0 : vector<1x128xf32>, vector<1x128xf32> -> vector<2x128xf32>
    %c0_17 = arith.constant 0 : index
    %c0_18 = arith.constant 0 : index
    %29 = vector.load %arg8[%c0_17, %c0_18] : memref<2x128xf32, #tpu.memory_space<vmem>>, vector<2x128xf32>
    tpu.vector_store %arg8[%c0_17, %c0_18], %28 {strides = array<i32>} : memref<2x128xf32, #tpu.memory_space<vmem>>, vector<2x128xf32>,
    return
  }
  func.func @transform_0(%arg0: i32) -> (i32, i32) {
    %c0_i32 = arith.constant 0 : i32
    %c0_i32_0 = arith.constant 0 : i32
    return %c0_i32, %arg0 : i32, i32
  }
  func.func @transform_1(%arg0: i32) -> (i32, i32) {
    %c0_i32 = arith.constant 0 : i32
    %c0_i32_0 = arith.constant 0 : i32
    %c0_i32_1 = arith.constant 0 : i32
    return %c0_i32, %c0_i32_0 : i32, i32
  }
  func.func @transform_2(%arg0: i32) -> (i32, i32) {
    %c0_i32 = arith.constant 0 : i32
    %c0_i32_0 = arith.constant 0 : i32
    %c0_i32_1 = arith.constant 0 : i32
    return %c0_i32, %c0_i32_0 : i32, i32
  }
  func.func @transform_3(%arg0: i32) -> (i32, i32) {
    %c0_i32 = arith.constant 0 : i32
    %c0_i32_0 = arith.constant 0 : i32
    %c0_i32_1 = arith.constant 0 : i32
    return %c0_i32, %c0_i32_0 : i32, i32
  }
  func.func @transform_4(%arg0: i32) -> (i32, i32) {
    %c0_i32 = arith.constant 0 : i32
    %c0_i32_0 = arith.constant 0 : i32
    %c0_i32_1 = arith.constant 0 : i32
    return %c0_i32, %c0_i32_0 : i32, i32
  }
  func.func @transform_5(%arg0: i32) -> (i32, i32) {
    %c0_i32 = arith.constant 0 : i32
    %c0_i32_0 = arith.constant 0 : i32
    %c0_i32_1 = arith.constant 0 : i32
    return %c0_i32, %c0_i32_0 : i32, i32
  }
  func.func @transform_6(%arg0: i32) -> (i32, i32) {
    %c0_i32 = arith.constant 0 : i32
    %c0_i32_0 = arith.constant 0 : i32
    %c0_i32_1 = arith.constant 0 : i32
    return %c0_i32, %c0_i32_0 : i32, i32
  }
  func.func @transform_7(%arg0: i32) -> (i32, i32) {
    %c0_i32 = arith.constant 0 : i32
    %c0_i32_0 = arith.constant 0 : i32
    return %c0_i32, %arg0 : i32, i32
  }
}

</mosaic_0001>

<bundles_post_ra>
// kernel: _mlp_policy_tan_pallas.1
= control target key start
LH: loop header
LB: loop body
LE: loop exit
PB: predicated region body
PF: predicated region fallthrough
CT: control target
= control target key end

     0   :  { %12 = vsyncpa [#allocation3], 0  ;;  %s964_s0 = inlined_call_operand.vmem [shape: f32[4,256], index: 0, kind: input, shape index: {}]   ;;  %s965_s1 = inlined_call_operand.vmem [shape: f32[16,4], index: 1, kind: input, shape index: {}]   ;;  %s966_s2 = inlined_call_operand.vmem [shape: f32[16,1], index: 2, kind: input, shape index: {}]   ;;  %s967_s3 = inlined_call_operand.vmem [shape: f32[8,16], index: 3, kind: input, shape index: {}]   ;;  %s968_s4 = inlined_call_operand.vmem [shape: f32[8,1], index: 4, kind: input, shape index: {}]   ;;  %s969_s5 = inlined_call_operand.vmem [shape: f32[2,8], index: 5, kind: input, shape index: {}]   ;;  %s970_s6 = inlined_call_operand.vmem [shape: f32[2,1], index: 6, kind: input, shape index: {}]   ;;  %s971_s7 = inlined_call_operand.hbm [shape: f32[2,256], index: 7, kind: output, shape index: {}]  }
   0x1   :  { %14 = vsyncpa [#allocation3 + $0x1], 0  ;;  %s838_s24 = smov 0   ;;  %s840_s25 = smov 0  }
   0x2   :  { %s842_s26 = smov 0   ;;  %s844_s27 = smov 0  }
   0x3 LB: > { %s859_s28 = sadd.s32 4294967295, %s791_s27   ;;  %s630_s29 = sadd.s32 4294967294, %s791_s27   ;;  %s791_s27 = sphi %s844_s27, %s977_s27   ;;  %s787_s26 = sphi %s842_s26, %s976_s26   ;;  %s783_s25 = sphi %s840_s25, %s975_s25   ;;  %s779_s24 = sphi %s838_s24, %s974_s24  }
   0x4   : > { %s863_s30 = sadd.s32 1, %s791_s27   ;;  %s179_s8 = sadd.s32 1, %s787_s26 }
   0x5   : > { %s176_s9 = ssub.s32 %s791_s27, %s863_s30  ;;  %p189_p0 = scmp.ne.s32.totalorder %s787_s26, %s783_s25 }
   0x6   : > { %p177_p1 = scmp.eq.s32.totalorder %s176_s9, 0  ;;  %p190_p2 = scmp.eq.s32.totalorder %s859_s28, 1 }
   0x7   : > { %p195_p3 = scmp.ne.s32.totalorder %s783_s25, %s779_s24  ;;  %p196_p4 = scmp.eq.s32.totalorder %s630_s29, 1 }
   0x8   : > { %s874_s10 = scalar_select %p177_p1, %s787_s26, %s179_s8  }
   0x9   : > { %p876_p5 = por %p190_p2, %p189_p0  ;;  %p880_p6 = por %p196_p4, %p195_p3 }
   0xa   : > { %p633_p7 = scmp.ge.s32.totalorder %s791_s27, 1  ;;  %p239_p8 = scmp.lt.s32.totalorder %s791_s27, 3 }
   0xc   : > { %p240_p9 = pnand %p633_p7, %p239_p8 }
   0xd   : > { %p270_p10 = scmp.lt.s32.totalorder (!%p240_p9), %s859_s28, 1  ;;  %v275_v0 = vld [vmem:[%s965_s1] sm:$0xff] (!%p240_p9)  ;;  %vm289_vm0 = vcmask (!%p240_p9), 31744   ;;  %v793_v1 = vmov (!%p240_p9), 0   ;;  %v278_v3 = vld [vmem:[%s966_s2 + $0x8] sm:$0xff] (!%p240_p9)  ;;  %vm296_vm1 = vcmask (!%p240_p9), 1043456  }
   0xe   : > { %243 = sbr.rel (%p240_p9) target bundleno = 748 (0x2ec), region = 48  ;;  %656 = vmatprep.mubr.msk.f32.mxu0 (!%p240_p9), %vm289_vm0, %v275_v0  ;;  %717 = vset.pattern.permute.xlu0 (!%p240_p9), %v793_v1  ;;  %v277_v2 = vld [vmem:[%s966_s2] sm:$0xff] (!%p240_p9)  ;;  %v276_v5 = vld [vmem:[%s965_s1 + $0x8] sm:$0xff] (!%p240_p9)  ;;  %v794_v6 = vmov (!%p240_p9), 0.0|0.0   ;;  %vm795_vm2 = vmmov (!%p240_p9), 0   ;;  %v796_v7 = vmov (!%p240_p9), 0.0  }
   0xf   : > { %281 = vperm.xlu0 (!%p240_p9), %717, %v277_v2   ;;  %718 = vset.pattern.permute.xlu1 (!%p240_p9), %v793_v1  ;;  %v378_v8 = vld [vmem:[%s968_s4] sm:$0xff] (!%p240_p9)  ;;  %vm384_vm3 = vcmask (!%p240_p9), 130048   ;;  %vm466_vm4 = vcmask (!%p240_p9), 64512   ;;  %s643_s22 = sshll.u32 (!%p240_p9), %s859_s28, 5  ;;  %vm554_vm5 = vcmask (!%p240_p9), 1040384  }
  0x10   : > { %671 = vmatprep.subr.bf16.mxu1 (!%p240_p9), %v794_v6  ;;  %663 = vmatprep.mubr.msk.f32.mxu1 (!%p240_p9), %vm795_vm2, %v796_v7  ;;  %v460_v9 = vld [vmem:[%s970_s6] sm:$0x3] (!%p240_p9)  ;;  %s922_s13 = scalar_lea.hbm (!%p240_p9), %s971_s7, %s643_s22 }
  0x11   : > { %381 = vperm.xlu1 (!%p240_p9), %718, %v378_v8   ;;  %v377_v19 = vld [vmem:[%s967_s3] sm:$0xff] (!%p240_p9) }
  0x12   : > { %v459_v24 = vld [vmem:[%s969_s5] sm:$0x3] (!%p240_p9) }
  0x13   : > { %286 = vperm.xlu0 (!%p240_p9), %717, %v278_v3  }
  0x15   : > { %s271_s17 = scalar_select %p270_p10, %s859_s28, 1  ;;  %463 = vperm.xlu1 %718, %v460_v9  }
  0x16   : > { %s797_s28 = smov [#allocation2]  }
  0x17   : > { %s635_s20 = sshll.u32 %s271_s17, 2  ;;  %s733_s16 = sshll.u32 %s797_s28, 4  ;;  %s734_s16 = int_to_ptr.vmem [resolvable:$false] %s733_s16 }
  0x18   : > { %s273_s23 = scalar_lea.vmem %s964_s0, %s635_s20  ;;  %s267_s20 = sand.u32 1, %s783_s25  }
  0x19   : > { %v274_v4 = vld [vmem:[%s273_s23] sm:$0xf]  ;;  %s634_s21 = sshll.u32 %s267_s20, 1  ;;  %s558_s14 = scalar_lea.sflag [#allocation3], %s267_s20 }
  0x1a   : > { %654 = vmatprep.subr.msk.mxu0 %vm296_vm1, %v274_v4  ;;  %s269_s23 = scalar_lea.vmem [#allocation2], %s634_s21  ;;  %s735_s17 = scalar_lea.vmem %s734_s16, 64 }
  0x1b   : > { %655 = vmatpush3.msk.msra.mxu0 %vm296_vm1, %v274_v4  ;;  %s571_s29 = sshll.u32 %s269_s23, 4  ;;  %s924_s29 = int_to_ptr.vmem [resolvable:$true] %s571_s29 }
  0x1c   : > { %657 = vmatmul.mubr.msk.f32.vlgmr.msra.gmra.mrb[0].mxu0 %vm289_vm0, %v276_v5  ;;  %666 = vmatprep.subr.mxu0 %v796_v7  ;;  %s729_s15 = scalar_lea.vmem %s924_s29, 32  ;;  %p736_p0 = scmp.lt.s32.totalorder %s924_s29, %s734_s16 }
  0x1d   : > { %668 = vmatprep.mubr.msk.f32.mxu0 %vm795_vm2, %v796_v7  ;;  %p730_p11 = scmp.ne.s32.totalorder %s924_s29, %s729_s15  ;;  %p737_p1 = scmp.lt.s32.totalorder %s735_s17, %s729_s15 }
  0x1f   : > { %p731_p12 = pnand %p730_p11, %p876_p5  ;;  %p738_p2 = por %p737_p1, %p736_p0 }
  0x21   : > { %p732_p13 = pneg %p731_p12 }
  0x23   : > { %p739_p3 = pnand %p738_p2, %p732_p13 }
  0x8e   : > { %v282_v10 = vpop.permute.xlu0 %281 }
  0x90   : > { %v382_v20 = vpop.permute.xlu1 %381 }
  0x92   : > { %v287_v11 = vpop.permute.xlu0 %286 }
  0x94   : > { %v464_v26 = vpop.permute.xlu1 %463 }
  0xef   : > { %v658_v12 = vpop.f32.mrb[0].mxu0 }
  0xf0   : > { %v372_v13 = vadd.f32 %v658_v12, %v287_v11  ;;  %v366_v14 = vpop.f32.mrb[1].mxu0 }
  0xf1   : > { %v367_v15 = vadd.f32 %v366_v14, %v282_v10 }
  0xf2   : > { %719 = vtanh.f32 %v372_v13 }
  0xf3   : > { %721 = vtanh.f32 %v367_v15 }
  0xfc   : > { %v720_v16 = vpop.eup %719 }
  0xfd   : > { %v722_v17 = vpop.eup %721 }
  0xfe   : > { %v672_v18 = vpack.c.bf16 %v720_v16, %v722_v17 }
 0x100   : > { %673 = vmatpush3.bf16.msra.mxu1 %v672_v18 }
 0x103   : > { %664 = vmatmul.mubr.msk.f32.vlgmr.msra.gmra.mrb[0].mxu1 %vm384_vm3, %v377_v19 }
 0x1d6   : > { %v454_v21 = vpop.f32.mrb[0].mxu1 }
 0x1d7   : > { %v455_v22 = vadd.f32 %v454_v21, %v382_v20  ;;  %v665_v23 = vpop.f32.mrb[1].mxu1 }
 0x1d9   : > { %723 = vtanh.f32 %v455_v22 }
 0x1e3   : > { %v724_v25 = vpop.eup %723 }
 0x1e4   : > { %667 = vmatpush3.msra.mxu0 %v724_v25 }
 0x1e5   : > { %669 = vmatmul.mubr.msk.f32.vlgmr.msra.gmra.mrb[2].mxu0 %vm466_vm4, %v459_v24 }
 0x2b8   : > { %v536_v27 = vpop.f32.mrb[2].mxu0 }
 0x2b9   : > { %v537_v28 = vadd.f32 %v536_v27, %v464_v26  ;;  %v670_v29 = vpop.f32.mrb[3].mxu0 }
 0x2bb   : > { %v541_v30 = vrot.slane %v537_v28, 1 }
 0x2bd   : > { %v543_v31 = vsub.f32 %v537_v28, %v541_v30 }
 0x2bf   : > { %v641_v32 = vmul.f32 -1.442695, %v543_v31 }
 0x2c1   : > { %725 = vpow2.f32 %v641_v32 }
 0x2cb   : > { %v726_v33 = vpop.eup %725 }
 0x2cc   : > { %v547_v34 = vadd.f32 1.0, %v726_v33 }
 0x2ce   : > { %727 = vrcp.f32 %v547_v34 }
 0x2d8   : > { %v728_v35 = vpop.eup %727 }
 0x2d9   : > { %v550_v36 = vsub.f32 1.0, %v728_v35 }
 0x2db   : > { %v552_v37 = vrot.slane %v550_v36, 7 }
 0x2dd   : > { %v555_v38 = vsel %vm554_vm5, %v728_v35, %v552_v37 }
 0x2de   : > { %556 = vst [vmem:[%s269_s23] sm:$0x3] %v555_v38 }
 0x2df   : > { %742 = shalt.err (!%p739_p3)
}
 0x2e0   : > { %s743_s18 = scalar_lea.hbm %s922_s13, 32  ;;  %s747_s21 = scalar_lea.hbm %s971_s7, 64 }
 0x2e1   : > { %p744_p4 = scmp.ne.s32.totalorder %s922_s13, %s743_s18  ;;  %p748_p9 = scmp.lt.u32.totalorder %s922_s13, %s971_s7 }
 0x2e2   : > { %p749_p10 = scmp.lt.u32.totalorder %s747_s21, %s743_s18  ;;  %p751_p12 = scmp.lt.u32.totalorder %s743_s18, %s922_s13 }
 0x2e3   : > { %p745_p7 = pnand %p744_p4, %p876_p5 }
 0x2e4   : > { %p750_p11 = por %p749_p10, %p748_p9 }
 0x2e5   : > { %p746_p8 = pneg %p745_p7 }
 0x2e6   : > { %p752_p13 = por %p751_p12, %p750_p11 }
 0x2e8   : > { %p753_p0 = pnand %p752_p13, %p746_p8 }
 0x2ea   : > { %756 = shalt.err (!%p753_p0)
}
 0x2eb   : > { %674 = dma.vmem_to_hbm [thread:$0]  (%p876_p5), %s924_s29, 32, %s922_s13, %s558_s14  }
 0x2ec PF: > { %p680_p1 = scmp.ge.s32.totalorder %s791_s27, 2  ;;  %s583_s8 = sand.u32 1, %s779_s24  }
 0x2ed   : > { %s584_s9 = scalar_lea.sflag [#allocation3], %s583_s8 }
 0x2ee   : > { %p677_p2 = pnand %p680_p1, %p880_p6 }
 0x2f0   : > { %774 = dma.done.wait (!%p677_p2), %s584_s9, 32  }
 0x2f1   : > { %776 = vsyncadd (!%p677_p2), %s584_s9, 4294967264  ;;  %p17_p3 = scmp.ge.s32.totalorder %s863_s30, 4   ;;  %s974_s24 = smov %s783_s25 }
 0x2f2   : > { %s975_s25 = smov %s787_s26  ;;  %s976_s26 = smov %s874_s10 }
 0x2f3   : > { %s977_s27 = smov %s863_s30  ;;  %19 = sbr.rel (!%p17_p3) target bundleno = 3 (0x3), region = 83 }
 0x2fa   :  { %589 = vsyncpa [#allocation3], 1 }
 0x2fb   :  { %591 = vsyncpa [#allocation3 + $0x1], 1 }

</bundles_post_ra>
